<compile_context>
chip_gen: v6e
topology: v6e:2x2x1
jax: 0.10.0
libtpu: 0.0.40
codegen_flags: <defaults>
</compile_context>

<pallas_src>
import jax
import jax.numpy as jnp
from jax.experimental import pallas as pl
from jax.experimental.pallas import tpu as pltpu

MODEL_DIM = 128
NUM_HIDDEN = 2            # LinearOutputStack(model_dim, 2)
NUM_LINEARS = NUM_HIDDEN + 1


def _leaky(v):
    # F.leaky_relu(v, 0.2)
    return jnp.where(v > 0, v, 0.2 * v)


# --------------------------------------------------------------------------
# Fused kernel: per grid step, (re)compute the two conditioning MLPs for the
# gB resident batch rows, then stream the FiLM modulation over a (gB, tT, D)
# tile of x.
# --------------------------------------------------------------------------
def modulator_kernel(cond_ref, ww_ref, wb_ref, bw_ref, bb_ref, x_ref, o_ref,
                     w_scr, b_scr):
    # cond_ref: (gB, D); weight stacks: (3, D, D); bias stacks: (3, 1, D)
    # x_ref/o_ref: (gB, tT, D); w_scr/b_scr: (gB, D) VMEM scratch.
    c = cond_ref[...]

    def run_stack(h, w_ref, b_ref):
        for i in range(NUM_HIDDEN):
            h = _leaky(jnp.dot(h, w_ref[i],
                               preferred_element_type=jnp.float32) + b_ref[i])
        return jnp.dot(h, w_ref[NUM_HIDDEN],
                       preferred_element_type=jnp.float32) + b_ref[NUM_HIDDEN]

    # FiLM params for the resident batch rows (tiny: gB x 128 each).
    w_scr[...] = run_stack(c, ww_ref, wb_ref)
    b_scr[...] = run_stack(c, bw_ref, bb_ref)

    gB = o_ref.shape[0]
    for bi in range(gB):                       # static unroll; gB <= 32
        w = w_scr[pl.ds(bi, 1), :]             # (1, D) -> sublane broadcast
        b = b_scr[pl.ds(bi, 1), :]
        o_ref[bi] = _leaky(x_ref[bi] * w + b).astype(o_ref.dtype)


def _pick_tiles(B, T, D, *, bytes_per_elem=4, vmem_budget=16 << 20,
                max_tile_t=1024, max_group_b=32):
    """Choose (gB, tT) so double-buffered in+out blocks fit the VMEM budget."""
    gB = B if B <= max_group_b else max_group_b      # 32 is a multiple of 8
    def blk_bytes(t):                                 # x + out, double-buffered
        return 4 * gB * t * D * bytes_per_elem
    tT = min(T, max_tile_t)
    while blk_bytes(tT) > vmem_budget and tT > 8:
        tT = max(8, tT // 2)
    if tT < T:                                        # partial-T tiling: 8-aligned
        tT = max(8, (tT // 8) * 8)
    return gB, tT


def modulator(x, cond, ww, wb, bw, bb, *, vmem_budget=16 << 20,
              max_tile_t=1024, max_group_b=32):
    """x: (B, T, D) f32, cond: (..., D) f32 -> (B, T, D) f32."""
    B, T, D = x.shape
    cond2 = cond.reshape(-1, D)                       # cond.view(-1, model_dim)
    assert cond2.shape[0] == B, "cond batch must match x batch"
    nl = ww.shape[0]

    gB, tT = _pick_tiles(B, T, D, vmem_budget=vmem_budget,
                         max_tile_t=max_tile_t, max_group_b=max_group_b)
    nGB = pl.cdiv(B, gB)
    nT = pl.cdiv(T, tT)

    steps = nGB * nT
    mlp_flops = steps * 2 * nl * 2 * gB * D * D       # 2 stacks x nl matmuls / step
    film_flops = 3 * B * T * D                        # mul + add + leaky select
    bytes_accessed = 4 * (2 * B * T * D + B * D + 2 * nl * (D * D + D))

    return pl.pallas_call(
        modulator_kernel,
        out_shape=jax.ShapeDtypeStruct((B, T, D), x.dtype),
        grid_spec=pltpu.PrefetchScalarGridSpec(
            num_scalar_prefetch=0,
            grid=(nGB, nT),
            in_specs=[
                pl.BlockSpec((gB, D), lambda i, j: (i, 0)),           # cond rows
                pl.BlockSpec((nl, D, D), lambda i, j: (0, 0, 0)),     # scale mats
                pl.BlockSpec((nl, 1, D), lambda i, j: (0, 0, 0)),     # scale biases
                pl.BlockSpec((nl, D, D), lambda i, j: (0, 0, 0)),     # shift mats
                pl.BlockSpec((nl, 1, D), lambda i, j: (0, 0, 0)),     # shift biases
                pl.BlockSpec((gB, tT, D), lambda i, j: (i, j, 0)),    # x tile
            ],
            out_specs=pl.BlockSpec((gB, tT, D), lambda i, j: (i, j, 0)),
            scratch_shapes=[pltpu.VMEM((gB, D), jnp.float32),
                            pltpu.VMEM((gB, D), jnp.float32)],
        ),
        compiler_params=pltpu.CompilerParams(
            # Every grid step is independent (params recomputed per step), so both
            # axes are safely "parallel"; on v7x this lets the 2 TCs split the work.
            dimension_semantics=("parallel", "parallel"),
            vmem_limit_bytes=32 * 1024 * 1024),
        cost_estimate=pl.CostEstimate(flops=int(mlp_flops + film_flops),
                                      transcendentals=0,
                                      bytes_accessed=int(bytes_accessed)),
    )(cond2, ww, wb, bw, bb, x)


# --------------------------------------------------------------------------
# Reference + init
# --------------------------------------------------------------------------
def modulator_reference(x, cond, ww, wb, bw, bb):
    def run_stack(h, W, Bs):
        for i in range(NUM_HIDDEN):
            h = _leaky(h @ W[i] + Bs[i, 0])
        return h @ W[NUM_HIDDEN] + Bs[NUM_HIDDEN, 0]
    c = cond.reshape(-1, MODEL_DIM)
    w = run_stack(c, ww, wb)[:, None, :]
    b = run_stack(c, bw, bb)[:, None, :]
    return _leaky(x * w + b)


def init_params(key, dim):
    """Deterministic nn.Linear-style uniform init for both stacks."""
    bound = 1.0 / jnp.sqrt(jnp.float32(dim))
    ks = jax.random.split(key, 4)
    ww = jax.random.uniform(ks[0], (NUM_LINEARS, dim, dim), jnp.float32, -bound, bound)
    wb = jax.random.uniform(ks[1], (NUM_LINEARS, 1, dim), jnp.float32, -bound, bound)
    bw = jax.random.uniform(ks[2], (NUM_LINEARS, dim, dim), jnp.float32, -bound, bound)
    bb = jax.random.uniform(ks[3], (NUM_LINEARS, 1, dim), jnp.float32, -bound, bound)
    return ww, wb, bw, bb


if __name__ == "__main__":
    D = MODEL_DIM
    key = jax.random.PRNGKey(0)
    kx, kc, kp, kx2, kc2, kx3 = jax.random.split(key, 6)
    ww, wb, bw, bb = init_params(kp, D)

    # Small shape consistent with the module (single grid step).
    B, T = 2, 8
    x = jax.random.normal(kx, (B, T, D), jnp.float32)
    cond = jax.random.normal(kc, (B, D), jnp.float32)
    out = jax.block_until_ready(modulator(x, cond, ww, wb, bw, bb))
    ref = modulator_reference(x, cond, ww, wb, bw, bb)
    assert out.shape == (B, T, D) and out.dtype == jnp.float32
    assert jnp.allclose(out, ref, rtol=1e-5, atol=1e-5)

    # Larger T: multi-tile streaming path with the batch folded into the block.
    T2 = 2048
    x2 = jax.random.normal(kx2, (B, T2, D), jnp.float32)
    out2 = jax.block_until_ready(modulator(x2, cond, ww, wb, bw, bb))
    ref2 = modulator_reference(x2, cond, ww, wb, bw, bb)
    assert out2.shape == (B, T2, D) and jnp.allclose(out2, ref2, rtol=1e-5, atol=1e-5)

    # Odd batch + non-divisible T: exercises a padded (partial) last T tile.
    B3, T3 = 3, 1300
    x3 = jax.random.normal(kx3, (B3, T3, D), jnp.float32)
    cond3 = jax.random.normal(kc2, (B3, D), jnp.float32)
    out3 = jax.block_until_ready(modulator(x3, cond3, ww, wb, bw, bb))
    ref3 = modulator_reference(x3, cond3, ww, wb, bw, bb)
    assert out3.shape == (B3, T3, D) and jnp.allclose(out3, ref3, rtol=1e-5, atol=1e-5)

    print("KERNEL_OK")
</pallas_src>

<mosaic_0001>
module attributes {stable_mosaic.version = 11 : i64} {
  func.func @modulator_kernel(%arg0: i32, %arg1: i32, %arg2: memref<2x128xf32, #tpu.memory_space<vmem>>, %arg3: memref<3x128x128xf32, #tpu.memory_space<vmem>>, %arg4: memref<3x1x128xf32, #tpu.memory_space<vmem>>, %arg5: memref<3x128x128xf32, #tpu.memory_space<vmem>>, %arg6: memref<3x1x128xf32, #tpu.memory_space<vmem>>, %arg7: memref<2x8x128xf32, #tpu.memory_space<vmem>>, %arg8: memref<2x8x128xf32, #tpu.memory_space<vmem>>, %arg9: memref<2x128xf32, #tpu.memory_space<vmem>>, %arg10: memref<2x128xf32, #tpu.memory_space<vmem>>) attributes {dimension_semantics = [#tpu.dimension_semantics<parallel>, #tpu.dimension_semantics<parallel>], iteration_bounds = array<i64: 1, 1>, scalar_prefetch = 0 : i64, scratch_operands = 2 : i64, tpu.core_type = #tpu.core_type<tc>, window_params = [{transform_indices = @transform_0, window_bounds = array<i64: 2, 128>}, {pipeline_mode = #tpu.pipeline_mode<synchronous>, transform_indices = @transform_1, window_bounds = array<i64: 3, 128, 128>}, {pipeline_mode = #tpu.pipeline_mode<synchronous>, transform_indices = @transform_2, window_bounds = array<i64: 3, 1, 128>}, {pipeline_mode = #tpu.pipeline_mode<synchronous>, transform_indices = @transform_3, window_bounds = array<i64: 3, 128, 128>}, {pipeline_mode = #tpu.pipeline_mode<synchronous>, transform_indices = @transform_4, window_bounds = array<i64: 3, 1, 128>}, {transform_indices = @transform_5, window_bounds = array<i64: 2, 8, 128>}, {transform_indices = @transform_6, window_bounds = array<i64: 2, 8, 128>}]} {
    %c0 = arith.constant 0 : index
    %c0_0 = arith.constant 0 : index
    %0 = vector.load %arg2[%c0, %c0_0] : memref<2x128xf32, #tpu.memory_space<vmem>>, vector<2x128xf32>
    %c0_1 = arith.constant 0 : index
    %c0_2 = arith.constant 0 : index
    %c0_3 = arith.constant 0 : index
    %1 = vector.load %arg3[%c0_1, %c0_2, %c0_3] : memref<3x128x128xf32, #tpu.memory_space<vmem>>, vector<1x128x128xf32>
    %2 = vector.shape_cast %1 : vector<1x128x128xf32> to vector<128x128xf32>
    %cst = arith.constant dense<0.000000e+00> : vector<2x128xf32>
    %3 = tpu.matmul %0, %2, %cst {dimension_numbers = #tpu.dot_dimension_numbers<[1], [0], [0], [1], [0, 0, 1, 1], [], []>} : vector<2x128xf32>, vector<128x128xf32>, vector<2x128xf32> -> vector<2x128xf32>
    %c0_4 = arith.constant 0 : index
    %c0_5 = arith.constant 0 : index
    %c0_6 = arith.constant 0 : index
    %4 = vector.load %arg4[%c0_4, %c0_5, %c0_6] : memref<3x1x128xf32, #tpu.memory_space<vmem>>, vector<1x1x128xf32>
    %5 = vector.shape_cast %4 : vector<1x1x128xf32> to vector<1x128xf32>
    %6 = vector.broadcast %5 : vector<1x128xf32> to vector<2x128xf32>
    %7 = arith.addf %3, %6 : vector<2x128xf32>
    %cst_7 = arith.constant 0.000000e+00 : f32
    %8 = vector.broadcast %cst_7 : f32 to vector<2x128xf32>
    %9 = arith.cmpf ogt, %7, %8 : vector<2x128xf32>
    %cst_8 = arith.constant 2.000000e-01 : f32
    %10 = vector.broadcast %cst_8 : f32 to vector<2x128xf32>
    %11 = arith.mulf %10, %7 : vector<2x128xf32>
    %12 = arith.select %9, %7, %11 : vector<2x128xi1>, vector<2x128xf32>
    %c1 = arith.constant 1 : index
    %c0_9 = arith.constant 0 : index
    %c0_10 = arith.constant 0 : index
    %13 = vector.load %arg3[%c1, %c0_9, %c0_10] : memref<3x128x128xf32, #tpu.memory_space<vmem>>, vector<1x128x128xf32>
    %14 = vector.shape_cast %13 : vector<1x128x128xf32> to vector<128x128xf32>
    %cst_11 = arith.constant dense<0.000000e+00> : vector<2x128xf32>
    %15 = tpu.matmul %12, %14, %cst_11 {dimension_numbers = #tpu.dot_dimension_numbers<[1], [0], [0], [1], [0, 0, 1, 1], [], []>} : vector<2x128xf32>, vector<128x128xf32>, vector<2x128xf32> -> vector<2x128xf32>
    %c1_12 = arith.constant 1 : index
    %c0_13 = arith.constant 0 : index
    %c0_14 = arith.constant 0 : index
    %16 = vector.load %arg4[%c1_12, %c0_13, %c0_14] : memref<3x1x128xf32, #tpu.memory_space<vmem>>, vector<1x1x128xf32>
    %17 = vector.shape_cast %16 : vector<1x1x128xf32> to vector<1x128xf32>
    %18 = vector.broadcast %17 : vector<1x128xf32> to vector<2x128xf32>
    %19 = arith.addf %15, %18 : vector<2x128xf32>
    %cst_15 = arith.constant 0.000000e+00 : f32
    %20 = vector.broadcast %cst_15 : f32 to vector<2x128xf32>
    %21 = arith.cmpf ogt, %19, %20 : vector<2x128xf32>
    %cst_16 = arith.constant 2.000000e-01 : f32
    %22 = vector.broadcast %cst_16 : f32 to vector<2x128xf32>
    %23 = arith.mulf %22, %19 : vector<2x128xf32>
    %24 = arith.select %21, %19, %23 : vector<2x128xi1>, vector<2x128xf32>
    %c2 = arith.constant 2 : index
    %c0_17 = arith.constant 0 : index
    %c0_18 = arith.constant 0 : index
    %25 = vector.load %arg3[%c2, %c0_17, %c0_18] : memref<3x128x128xf32, #tpu.memory_space<vmem>>, vector<1x128x128xf32>
    %26 = vector.shape_cast %25 : vector<1x128x128xf32> to vector<128x128xf32>
    %cst_19 = arith.constant dense<0.000000e+00> : vector<2x128xf32>
    %27 = tpu.matmul %24, %26, %cst_19 {dimension_numbers = #tpu.dot_dimension_numbers<[1], [0], [0], [1], [0, 0, 1, 1], [], []>} : vector<2x128xf32>, vector<128x128xf32>, vector<2x128xf32> -> vector<2x128xf32>
    %c2_20 = arith.constant 2 : index
    %c0_21 = arith.constant 0 : index
    %c0_22 = arith.constant 0 : index
    %28 = vector.load %arg4[%c2_20, %c0_21, %c0_22] : memref<3x1x128xf32, #tpu.memory_space<vmem>>, vector<1x1x128xf32>
    %29 = vector.shape_cast %28 : vector<1x1x128xf32> to vector<1x128xf32>
    %30 = vector.broadcast %29 : vector<1x128xf32> to vector<2x128xf32>
    %31 = arith.addf %27, %30 : vector<2x128xf32>
    %c0_23 = arith.constant 0 : index
    %c0_24 = arith.constant 0 : index
    %32 = vector.load %arg9[%c0_23, %c0_24] : memref<2x128xf32, #tpu.memory_space<vmem>>, vector<2x128xf32>
    tpu.vector_store %arg9[%c0_23, %c0_24], %31 {strides = array<i32>} : memref<2x128xf32, #tpu.memory_space<vmem>>, vector<2x128xf32>,
    %c0_25 = arith.constant 0 : index
    %c0_26 = arith.constant 0 : index
    %c0_27 = arith.constant 0 : index
    %33 = vector.load %arg5[%c0_25, %c0_26, %c0_27] : memref<3x128x128xf32, #tpu.memory_space<vmem>>, vector<1x128x128xf32>
    %34 = vector.shape_cast %33 : vector<1x128x128xf32> to vector<128x128xf32>
    %cst_28 = arith.constant dense<0.000000e+00> : vector<2x128xf32>
    %35 = tpu.matmul %0, %34, %cst_28 {dimension_numbers = #tpu.dot_dimension_numbers<[1], [0], [0], [1], [0, 0, 1, 1], [], []>} : vector<2x128xf32>, vector<128x128xf32>, vector<2x128xf32> -> vector<2x128xf32>
    %c0_29 = arith.constant 0 : index
    %c0_30 = arith.constant 0 : index
    %c0_31 = arith.constant 0 : index
    %36 = vector.load %arg6[%c0_29, %c0_30, %c0_31] : memref<3x1x128xf32, #tpu.memory_space<vmem>>, vector<1x1x128xf32>
    %37 = vector.shape_cast %36 : vector<1x1x128xf32> to vector<1x128xf32>
    %38 = vector.broadcast %37 : vector<1x128xf32> to vector<2x128xf32>
    %39 = arith.addf %35, %38 : vector<2x128xf32>
    %cst_32 = arith.constant 0.000000e+00 : f32
    %40 = vector.broadcast %cst_32 : f32 to vector<2x128xf32>
    %41 = arith.cmpf ogt, %39, %40 : vector<2x128xf32>
    %cst_33 = arith.constant 2.000000e-01 : f32
    %42 = vector.broadcast %cst_33 : f32 to vector<2x128xf32>
    %43 = arith.mulf %42, %39 : vector<2x128xf32>
    %44 = arith.select %41, %39, %43 : vector<2x128xi1>, vector<2x128xf32>
    %c1_34 = arith.constant 1 : index
    %c0_35 = arith.constant 0 : index
    %c0_36 = arith.constant 0 : index
    %45 = vector.load %arg5[%c1_34, %c0_35, %c0_36] : memref<3x128x128xf32, #tpu.memory_space<vmem>>, vector<1x128x128xf32>
    %46 = vector.shape_cast %45 : vector<1x128x128xf32> to vector<128x128xf32>
    %cst_37 = arith.constant dense<0.000000e+00> : vector<2x128xf32>
    %47 = tpu.matmul %44, %46, %cst_37 {dimension_numbers = #tpu.dot_dimension_numbers<[1], [0], [0], [1], [0, 0, 1, 1], [], []>} : vector<2x128xf32>, vector<128x128xf32>, vector<2x128xf32> -> vector<2x128xf32>
    %c1_38 = arith.constant 1 : index
    %c0_39 = arith.constant 0 : index
    %c0_40 = arith.constant 0 : index
    %48 = vector.load %arg6[%c1_38, %c0_39, %c0_40] : memref<3x1x128xf32, #tpu.memory_space<vmem>>, vector<1x1x128xf32>
    %49 = vector.shape_cast %48 : vector<1x1x128xf32> to vector<1x128xf32>
    %50 = vector.broadcast %49 : vector<1x128xf32> to vector<2x128xf32>
    %51 = arith.addf %47, %50 : vector<2x128xf32>
    %cst_41 = arith.constant 0.000000e+00 : f32
    %52 = vector.broadcast %cst_41 : f32 to vector<2x128xf32>
    %53 = arith.cmpf ogt, %51, %52 : vector<2x128xf32>
    %cst_42 = arith.constant 2.000000e-01 : f32
    %54 = vector.broadcast %cst_42 : f32 to vector<2x128xf32>
    %55 = arith.mulf %54, %51 : vector<2x128xf32>
    %56 = arith.select %53, %51, %55 : vector<2x128xi1>, vector<2x128xf32>
    %c2_43 = arith.constant 2 : index
    %c0_44 = arith.constant 0 : index
    %c0_45 = arith.constant 0 : index
    %57 = vector.load %arg5[%c2_43, %c0_44, %c0_45] : memref<3x128x128xf32, #tpu.memory_space<vmem>>, vector<1x128x128xf32>
    %58 = vector.shape_cast %57 : vector<1x128x128xf32> to vector<128x128xf32>
    %cst_46 = arith.constant dense<0.000000e+00> : vector<2x128xf32>
    %59 = tpu.matmul %56, %58, %cst_46 {dimension_numbers = #tpu.dot_dimension_numbers<[1], [0], [0], [1], [0, 0, 1, 1], [], []>} : vector<2x128xf32>, vector<128x128xf32>, vector<2x128xf32> -> vector<2x128xf32>
    %c2_47 = arith.constant 2 : index
    %c0_48 = arith.constant 0 : index
    %c0_49 = arith.constant 0 : index
    %60 = vector.load %arg6[%c2_47, %c0_48, %c0_49] : memref<3x1x128xf32, #tpu.memory_space<vmem>>, vector<1x1x128xf32>
    %61 = vector.shape_cast %60 : vector<1x1x128xf32> to vector<1x128xf32>
    %62 = vector.broadcast %61 : vector<1x128xf32> to vector<2x128xf32>
    %63 = arith.addf %59, %62 : vector<2x128xf32>
    %c0_50 = arith.constant 0 : index
    %c0_51 = arith.constant 0 : index
    %64 = vector.load %arg10[%c0_50, %c0_51] : memref<2x128xf32, #tpu.memory_space<vmem>>, vector<2x128xf32>
    tpu.vector_store %arg10[%c0_50, %c0_51], %63 {strides = array<i32>} : memref<2x128xf32, #tpu.memory_space<vmem>>, vector<2x128xf32>,
    %c0_52 = arith.constant 0 : index
    %c0_53 = arith.constant 0 : index
    %65 = vector.load %arg9[%c0_52, %c0_53] : memref<2x128xf32, #tpu.memory_space<vmem>>, vector<1x128xf32>
    %c0_54 = arith.constant 0 : index
    %c0_55 = arith.constant 0 : index
    %66 = vector.load %arg10[%c0_54, %c0_55] : memref<2x128xf32, #tpu.memory_space<vmem>>, vector<1x128xf32>
    %c0_56 = arith.constant 0 : index
    %c0_57 = arith.constant 0 : index
    %c0_58 = arith.constant 0 : index
    %67 = vector.load %arg7[%c0_56, %c0_57, %c0_58] : memref<2x8x128xf32, #tpu.memory_space<vmem>>, vector<1x8x128xf32>
    %68 = vector.shape_cast %67 : vector<1x8x128xf32> to vector<8x128xf32>
    %69 = vector.broadcast %65 : vector<1x128xf32> to vector<8x128xf32>
    %70 = arith.mulf %68, %69 : vector<8x128xf32>
    %71 = vector.broadcast %66 : vector<1x128xf32> to vector<8x128xf32>
    %72 = arith.addf %70, %71 : vector<8x128xf32>
    %cst_59 = arith.constant 0.000000e+00 : f32
    %73 = vector.broadcast %cst_59 : f32 to vector<8x128xf32>
    %74 = arith.cmpf ogt, %72, %73 : vector<8x128xf32>
    %cst_60 = arith.constant 2.000000e-01 : f32
    %75 = vector.broadcast %cst_60 : f32 to vector<8x128xf32>
    %76 = arith.mulf %75, %72 : vector<8x128xf32>
    %77 = arith.select %74, %72, %76 : vector<8x128xi1>, vector<8x128xf32>
    %c0_61 = arith.constant 0 : index
    %c0_62 = arith.constant 0 : index
    %c0_63 = arith.constant 0 : index
    %78 = vector.load %arg8[%c0_61, %c0_62, %c0_63] : memref<2x8x128xf32, #tpu.memory_space<vmem>>, vector<1x8x128xf32>
    %79 = vector.shape_cast %78 : vector<1x8x128xf32> to vector<8x128xf32>
    %80 = vector.shape_cast %77 : vector<8x128xf32> to vector<1x8x128xf32>
    tpu.vector_store %arg8[%c0_61, %c0_62, %c0_63], %80 {strides = array<i32>} : memref<2x8x128xf32, #tpu.memory_space<vmem>>, vector<1x8x128xf32>,
    %c1_64 = arith.constant 1 : index
    %c0_65 = arith.constant 0 : index
    %81 = vector.load %arg9[%c1_64, %c0_65] : memref<2x128xf32, #tpu.memory_space<vmem>>, vector<1x128xf32>
    %c1_66 = arith.constant 1 : index
    %c0_67 = arith.constant 0 : index
    %82 = vector.load %arg10[%c1_66, %c0_67] : memref<2x128xf32, #tpu.memory_space<vmem>>, vector<1x128xf32>
    %c1_68 = arith.constant 1 : index
    %c0_69 = arith.constant 0 : index
    %c0_70 = arith.constant 0 : index
    %83 = vector.load %arg7[%c1_68, %c0_69, %c0_70] : memref<2x8x128xf32, #tpu.memory_space<vmem>>, vector<1x8x128xf32>
    %84 = vector.shape_cast %83 : vector<1x8x128xf32> to vector<8x128xf32>
    %85 = vector.broadcast %81 : vector<1x128xf32> to vector<8x128xf32>
    %86 = arith.mulf %84, %85 : vector<8x128xf32>
    %87 = vector.broadcast %82 : vector<1x128xf32> to vector<8x128xf32>
    %88 = arith.addf %86, %87 : vector<8x128xf32>
    %cst_71 = arith.constant 0.000000e+00 : f32
    %89 = vector.broadcast %cst_71 : f32 to vector<8x128xf32>
    %90 = arith.cmpf ogt, %88, %89 : vector<8x128xf32>
    %cst_72 = arith.constant 2.000000e-01 : f32
    %91 = vector.broadcast %cst_72 : f32 to vector<8x128xf32>
    %92 = arith.mulf %91, %88 : vector<8x128xf32>
    %93 = arith.select %90, %88, %92 : vector<8x128xi1>, vector<8x128xf32>
    %c1_73 = arith.constant 1 : index
    %c0_74 = arith.constant 0 : index
    %c0_75 = arith.constant 0 : index
    %94 = vector.load %arg8[%c1_73, %c0_74, %c0_75] : memref<2x8x128xf32, #tpu.memory_space<vmem>>, vector<1x8x128xf32>
    %95 = vector.shape_cast %94 : vector<1x8x128xf32> to vector<8x128xf32>
    %96 = vector.shape_cast %93 : vector<8x128xf32> to vector<1x8x128xf32>
    tpu.vector_store %arg8[%c1_73, %c0_74, %c0_75], %96 {strides = array<i32>} : memref<2x8x128xf32, #tpu.memory_space<vmem>>, vector<1x8x128xf32>,
    return
  }
  func.func @transform_0(%arg0: i32, %arg1: i32) -> (i32, i32) {
    %c0_i32 = arith.constant 0 : i32
    %c0_i32_0 = arith.constant 0 : i32
    return %arg0, %c0_i32 : i32, i32
  }
  func.func @transform_1(%arg0: i32, %arg1: i32) -> (i32, i32, i32) {
    %c0_i32 = arith.constant 0 : i32
    %c0_i32_0 = arith.constant 0 : i32
    %c0_i32_1 = arith.constant 0 : i32
    %c0_i32_2 = arith.constant 0 : i32
    return %c0_i32, %c0_i32_0, %c0_i32_1 : i32, i32, i32
  }
  func.func @transform_2(%arg0: i32, %arg1: i32) -> (i32, i32, i32) {
    %c0_i32 = arith.constant 0 : i32
    %c0_i32_0 = arith.constant 0 : i32
    %c0_i32_1 = arith.constant 0 : i32
    %c0_i32_2 = arith.constant 0 : i32
    return %c0_i32, %c0_i32_0, %c0_i32_1 : i32, i32, i32
  }
  func.func @transform_3(%arg0: i32, %arg1: i32) -> (i32, i32, i32) {
    %c0_i32 = arith.constant 0 : i32
    %c0_i32_0 = arith.constant 0 : i32
    %c0_i32_1 = arith.constant 0 : i32
    %c0_i32_2 = arith.constant 0 : i32
    return %c0_i32, %c0_i32_0, %c0_i32_1 : i32, i32, i32
  }
  func.func @transform_4(%arg0: i32, %arg1: i32) -> (i32, i32, i32) {
    %c0_i32 = arith.constant 0 : i32
    %c0_i32_0 = arith.constant 0 : i32
    %c0_i32_1 = arith.constant 0 : i32
    %c0_i32_2 = arith.constant 0 : i32
    return %c0_i32, %c0_i32_0, %c0_i32_1 : i32, i32, i32
  }
  func.func @transform_5(%arg0: i32, %arg1: i32) -> (i32, i32, i32) {
    %c0_i32 = arith.constant 0 : i32
    %c0_i32_0 = arith.constant 0 : i32
    return %arg0, %arg1, %c0_i32 : i32, i32, i32
  }
  func.func @transform_6(%arg0: i32, %arg1: i32) -> (i32, i32, i32) {
    %c0_i32 = arith.constant 0 : i32
    %c0_i32_0 = arith.constant 0 : i32
    return %arg0, %arg1, %c0_i32 : i32, i32, i32
  }
}

</mosaic_0001>

<bundles_post_ra>
// kernel: tpu_custom_call.1
= control target key start
LH: loop header
LB: loop body
LE: loop exit
PB: predicated region body
PF: predicated region fallthrough
CT: control target
= control target key end

     0   :  { %11 = vsyncpa [#allocation5], 0  ;;  %s1357_s0 = inlined_call_operand.hbm [shape: f32[2,128], index: 0, kind: input, shape index: {}]   ;;  %s1358_s1 = inlined_call_operand.hbm [shape: f32[3,128,128], index: 1, kind: input, shape index: {}]   ;;  %s1359_s2 = inlined_call_operand.vmem [shape: f32[3,1,128], index: 2, kind: input, shape index: {}]   ;;  %s1360_s3 = inlined_call_operand.hbm [shape: f32[3,128,128], index: 3, kind: input, shape index: {}]   ;;  %s1361_s4 = inlined_call_operand.vmem [shape: f32[3,1,128], index: 4, kind: input, shape index: {}]   ;;  %s1362_s5 = inlined_call_operand.hbm [shape: f32[2,8,128], index: 5, kind: input, shape index: {}]   ;;  %s1363_s6 = inlined_call_operand.hbm [shape: f32[2,8,128], index: 6, kind: output, shape index: {}]  }
   0x1   :  { %12 = vsyncpa [#allocation8], 0 }
   0x2   :  { %13 = vsyncpa [#allocation11], 0 }
   0x3   :  { %14 = vsyncpa [#allocation6], 0  ;;  %s1156_s21 = smov [#allocation7]  }
   0x4   :  { %s30_s22 = sshll.u32 %s1156_s21, 4  ;;  %s31_s22 = int_to_ptr.vmem [resolvable:$true] %s30_s22 }
   0x5   :  { %s1056_s23 = scalar_lea.vmem %s31_s22, 6144  ;;  %p1061_p1 = scmp.lt.s32.totalorder %s31_s22, %s31_s22 }
   0x6   :  { %p1057_p0 = scmp.ne.s32.totalorder %s31_s22, %s1056_s23  ;;  %p1062_p2 = scmp.lt.s32.totalorder %s1056_s23, %s1056_s23 }
   0x8   :  { %p1063_p3 = por %p1062_p2, %p1061_p1 }
   0xa   :  { %p1064_p4 = pnand %p1063_p3, %p1057_p0 }
   0xc   :  { %1067 = shalt.err (!%p1064_p4)
}
   0xd   :  { %s1157_s24 = smov 128   ;;  %s1158_s25 = smov 8  }
   0xe   :  { %36 = dma.hbm_to_vmem [thread:$0]  %s1358_s1, 6144, %s31_s22, [#allocation8], %s1157_s24, %s1157_s24, %s1158_s25  }
   0xf   :  { %s1159_s28 = smov [#allocation4]   ;;  %s1160_s30 = smov [#allocation9]  }
  0x10   :  { %s21_s29 = sshll.u32 %s1159_s28, 4  ;;  %s44_s7 = sshll.u32 %s1160_s30, 4  ;;  %s22_s29 = int_to_ptr.vmem [resolvable:$true] %s21_s29  ;;  %s45_s7 = int_to_ptr.vmem [resolvable:$true] %s44_s7 }
  0x11   :  { %s1076_s8 = scalar_lea.vmem %s22_s29, 32  ;;  %p1081_p6 = scmp.lt.s32.totalorder %s22_s29, %s22_s29 }
  0x12   :  { %p1077_p5 = scmp.ne.s32.totalorder %s22_s29, %s1076_s8  ;;  %p1082_p7 = scmp.lt.s32.totalorder %s1076_s8, %s1076_s8 }
  0x14   :  { %p1083_p8 = por %p1082_p7, %p1081_p6 }
  0x16   :  { %p1084_p9 = pnand %p1083_p8, %p1077_p5 }
  0x18   :  { %1087 = shalt.err (!%p1084_p9)
}
  0x19   :  { %24 = dma.hbm_to_vmem [thread:$0]  %s1357_s0, 32, %s22_s29, [#allocation5]  }
  0x1a   :  { %s1096_s11 = scalar_lea.vmem %s45_s7, 6144  ;;  %p1101_p11 = scmp.lt.s32.totalorder %s45_s7, %s45_s7 }
  0x1b   :  { %p1097_p10 = scmp.ne.s32.totalorder %s45_s7, %s1096_s11  ;;  %p1102_p12 = scmp.lt.s32.totalorder %s1096_s11, %s1096_s11 }
  0x1d   :  { %p1103_p13 = por %p1102_p12, %p1101_p11 }
  0x1f   :  { %p1104_p0 = pnand %p1103_p13, %p1097_p10 }
  0x21   :  { %1107 = shalt.err (!%p1104_p0)
}
  0x22   :  { %50 = dma.hbm_to_vmem [thread:$0]  %s1360_s3, 6144, %s45_s7, [#allocation8], %s1157_s24, %s1157_s24, %s1158_s25  }
  0x23   :  { %s1161_s13 = smov [#allocation10]  }
  0x24   :  { %s58_s14 = sshll.u32 %s1161_s13, 4  ;;  %s59_s14 = int_to_ptr.vmem [resolvable:$true] %s58_s14 }
  0x25   :  { %s1116_s15 = scalar_lea.vmem %s59_s14, 256  ;;  %p1121_p2 = scmp.lt.s32.totalorder %s59_s14, %s59_s14 }
  0x26   :  { %p1117_p1 = scmp.ne.s32.totalorder %s59_s14, %s1116_s15  ;;  %p1122_p3 = scmp.lt.s32.totalorder %s1116_s15, %s1116_s15 }
  0x28   :  { %p1123_p4 = por %p1122_p3, %p1121_p2 }
  0x2a   :  { %p1124_p5 = pnand %p1123_p4, %p1117_p1 }
  0x2c   :  { %1127 = shalt.err (!%p1124_p5)
}
  0x2d   :  { %64 = dma.hbm_to_vmem [thread:$0]  %s1362_s5, 256, %s59_s14, [#allocation11], %s1157_s24, %s1157_s24, %s1158_s25  }
  0x2e   :  { %1148 = dma.done.wait [#allocation5], 32  }
  0x2f   :  { %1149 = vsyncadd [#allocation5], 4294967264 }
  0x30   :  { %1150 = dma.done.wait [#allocation8], 12288  }
  0x31   :  { %1151 = vsyncadd [#allocation8], 4294955008 }
  0x32   :  { %1152 = dma.done.wait [#allocation11], 256  }
  0x33   :  { %1153 = vsyncadd [#allocation11], 4294967040  ;;  %v1162_v0 = vmov 0.0   ;;  %vm1163_vm0 = vmmov 0   ;;  %v93_v1 = vld [vmem:[#allocation7 + $0x78] sm:$0xff]  ;;  %v92_v2 = vld [vmem:[#allocation7 + $0x70] sm:$0xff] }
  0x34   :  { %829 = vmatprep.subr.mxu0 %v1162_v0  ;;  %861 = vmatprep.mubr.msk.f32.mxu0 %vm1163_vm0, %v1162_v0  ;;  %v91_v3 = vld [vmem:[#allocation7 + $0x68] sm:$0xff]  ;;  %v90_v4 = vld [vmem:[#allocation7 + $0x60] sm:$0xff]  ;;  %v190_v5 = vld [vmem:[#allocation7 + $0xf8] sm:$0xff] }
  0x35   :  { %864 = vmatprep.subr.mxu1 %v1162_v0  ;;  %896 = vmatprep.mubr.msk.f32.mxu1 %vm1163_vm0, %v1162_v0  ;;  %v89_v6 = vld [vmem:[#allocation7 + $0x58] sm:$0xff]  ;;  %v189_v7 = vld [vmem:[#allocation7 + $0xf0] sm:$0xff]  ;;  %v188_v8 = vld [vmem:[#allocation7 + $0xe8] sm:$0xff] }
  0x36   :  { %830 = vmatpush3.msra.mxu0 %v93_v1  ;;  %865 = vmatpush3.msra.mxu1 %v190_v5  ;;  %v88_v9 = vld [vmem:[#allocation7 + $0x50] sm:$0xff]  ;;  %v187_v10 = vld [vmem:[#allocation7 + $0xe0] sm:$0xff]  ;;  %v87_v11 = vld [vmem:[#allocation7 + $0x48] sm:$0xff] }
  0x37   :  { %831 = vmatprep.subr.mxu0 %v1162_v0  ;;  %866 = vmatprep.subr.mxu1 %v1162_v0  ;;  %v186_v12 = vld [vmem:[#allocation7 + $0xd8] sm:$0xff]  ;;  %v86_v13 = vld [vmem:[#allocation7 + $0x40] sm:$0xff]  ;;  %v185_v14 = vld [vmem:[#allocation7 + $0xd0] sm:$0xff] }
  0x38   :  { %832 = vmatpush3.msra.mxu0 %v92_v2  ;;  %867 = vmatpush3.msra.mxu1 %v189_v7  ;;  %v85_v15 = vld [vmem:[#allocation7 + $0x38] sm:$0xff]  ;;  %v184_v16 = vld [vmem:[#allocation7 + $0xc8] sm:$0xff]  ;;  %v84_v17 = vld [vmem:[#allocation7 + $0x30] sm:$0xff] }
  0x39   :  { %833 = vmatprep.subr.mxu0 %v1162_v0  ;;  %868 = vmatprep.subr.mxu1 %v1162_v0  ;;  %v183_v18 = vld [vmem:[#allocation7 + $0xc0] sm:$0xff]  ;;  %v83_v19 = vld [vmem:[#allocation7 + $0x28] sm:$0xff]  ;;  %v182_v20 = vld [vmem:[#allocation7 + $0xb8] sm:$0xff] }
  0x3a   :  { %834 = vmatpush3.msra.mxu0 %v91_v3  ;;  %869 = vmatpush3.msra.mxu1 %v188_v8  ;;  %v82_v21 = vld [vmem:[#allocation7 + $0x20] sm:$0xff]  ;;  %v181_v22 = vld [vmem:[#allocation7 + $0xb0] sm:$0xff]  ;;  %v81_v23 = vld [vmem:[#allocation7 + $0x18] sm:$0xff] }
  0x3b   :  { %835 = vmatprep.subr.mxu0 %v1162_v0  ;;  %870 = vmatprep.subr.mxu1 %v1162_v0  ;;  %v180_v24 = vld [vmem:[#allocation7 + $0xa8] sm:$0xff]  ;;  %v80_v25 = vld [vmem:[#allocation7 + $0x10] sm:$0xff]  ;;  %v179_v26 = vld [vmem:[#allocation7 + $0xa0] sm:$0xff] }
  0x3c   :  { %836 = vmatpush3.msra.mxu0 %v90_v4  ;;  %871 = vmatpush3.msra.mxu1 %v187_v10  ;;  %v79_v27 = vld [vmem:[#allocation7 + $0x8] sm:$0xff]  ;;  %v178_v28 = vld [vmem:[#allocation7 + $0x98] sm:$0xff]  ;;  %v78_v29 = vld [vmem:[#allocation7] sm:$0xff] }
  0x3d   :  { %837 = vmatprep.subr.mxu0 %v1162_v0  ;;  %872 = vmatprep.subr.mxu1 %v1162_v0  ;;  %v1252_v30 = vld [vmem:[#allocation4] sm:$0x3]  ;;  %v177_v31 = vld [vmem:[#allocation7 + $0x90] sm:$0xff]  ;;  %v176_v32 = vld [vmem:[#allocation7 + $0x88] sm:$0xff] }
  0x3e   :  { %838 = vmatpush3.msra.mxu0 %v89_v6  ;;  %873 = vmatpush3.msra.mxu1 %v186_v12  ;;  %v175_v33 = vld [vmem:[#allocation7 + $0x80] sm:$0xff]  ;;  %v288_v34 = vld [vmem:[#allocation7 + $0x178] sm:$0xff]  ;;  %v287_v35 = vld [vmem:[#allocation7 + $0x170] sm:$0xff] }
  0x3f   :  { %839 = vmatprep.subr.mxu0 %v1162_v0  ;;  %874 = vmatprep.subr.mxu1 %v1162_v0  ;;  %v286_v36 = vld [vmem:[#allocation7 + $0x168] sm:$0xff]  ;;  %v285_v37 = vld [vmem:[#allocation7 + $0x160] sm:$0xff]  ;;  %v284_v38 = vld [vmem:[#allocation7 + $0x158] sm:$0xff] }
  0x40   :  { %840 = vmatpush3.msra.mxu0 %v88_v9  ;;  %875 = vmatpush3.msra.mxu1 %v185_v14  ;;  %v283_v39 = vld [vmem:[#allocation7 + $0x150] sm:$0xff]  ;;  %v282_v40 = vld [vmem:[#allocation7 + $0x148] sm:$0xff]  ;;  %v281_v41 = vld [vmem:[#allocation7 + $0x140] sm:$0xff] }
  0x41   :  { %841 = vmatprep.subr.mxu0 %v1162_v0  ;;  %876 = vmatprep.subr.mxu1 %v1162_v0  ;;  %v280_v42 = vld [vmem:[#allocation7 + $0x138] sm:$0xff]  ;;  %v279_v43 = vld [vmem:[#allocation7 + $0x130] sm:$0xff]  ;;  %v278_v44 = vld [vmem:[#allocation7 + $0x128] sm:$0xff] }
  0x42   :  { %842 = vmatpush3.msra.mxu0 %v87_v11  ;;  %877 = vmatpush3.msra.mxu1 %v184_v16  ;;  %v277_v45 = vld [vmem:[#allocation7 + $0x120] sm:$0xff]  ;;  %v276_v46 = vld [vmem:[#allocation7 + $0x118] sm:$0xff]  ;;  %v713_v47 = vld [vmem:[%s1359_s2] ss:$0 sm:$0xff] }
  0x43   :  { %843 = vmatprep.subr.mxu0 %v1162_v0  ;;  %878 = vmatprep.subr.mxu1 %v1162_v0  ;;  %v383_v52 = vld [vmem:[#allocation9 + $0x78] sm:$0xff]  ;;  %v382_v54 = vld [vmem:[#allocation9 + $0x70] sm:$0xff]  ;;  %v381_v55 = vld [vmem:[#allocation9 + $0x68] sm:$0xff] }
  0x44   :  { %844 = vmatpush3.msra.mxu0 %v86_v13  ;;  %879 = vmatpush3.msra.mxu1 %v183_v18  ;;  %v380_v56 = vld [vmem:[#allocation9 + $0x60] sm:$0xff]  ;;  %v379_v57 = vld [vmem:[#allocation9 + $0x58] sm:$0xff]  ;;  %v378_v58 = vld [vmem:[#allocation9 + $0x50] sm:$0xff] }
  0x45   :  { %845 = vmatprep.subr.mxu0 %v1162_v0  ;;  %880 = vmatprep.subr.mxu1 %v1162_v0  ;;  %v377_v59 = vld [vmem:[#allocation9 + $0x48] sm:$0xff]  ;;  %v376_v60 = vld [vmem:[#allocation9 + $0x40] sm:$0xff]  ;;  %v375_v61 = vld [vmem:[#allocation9 + $0x38] sm:$0xff] }
  0x46   :  { %846 = vmatpush3.msra.mxu0 %v85_v15  ;;  %881 = vmatpush3.msra.mxu1 %v182_v20  ;;  %v374_v62 = vld [vmem:[#allocation9 + $0x30] sm:$0xff]  ;;  %v373_v63 = vld [vmem:[#allocation9 + $0x28] sm:$0xff]  ;;  %v372_v1 = vld [vmem:[#allocation9 + $0x20] sm:$0xff] }
  0x47   :  { %847 = vmatprep.subr.mxu0 %v1162_v0  ;;  %882 = vmatprep.subr.mxu1 %v1162_v0  ;;  %v371_v2 = vld [vmem:[#allocation9 + $0x18] sm:$0xff]  ;;  %v370_v3 = vld [vmem:[#allocation9 + $0x10] sm:$0xff]  ;;  %v369_v4 = vld [vmem:[#allocation9 + $0x8] sm:$0xff] }
  0x48   :  { %848 = vmatpush3.msra.mxu0 %v84_v17  ;;  %883 = vmatpush3.msra.mxu1 %v181_v22  ;;  %v368_v5 = vld [vmem:[#allocation9] sm:$0xff]  ;;  %v275_v6 = vld [vmem:[#allocation7 + $0x110] sm:$0xff]  ;;  %v274_v7 = vld [vmem:[#allocation7 + $0x108] sm:$0xff] }
  0x49   :  { %849 = vmatprep.subr.mxu0 %v1162_v0  ;;  %884 = vmatprep.subr.mxu1 %v1162_v0  ;;  %v273_v8 = vld [vmem:[#allocation7 + $0x100] sm:$0xff]  ;;  %v715_v9 = vld [vmem:[%s1359_s2 + $0x1] ss:$0 sm:$0xff]  ;;  %v480_v14 = vld [vmem:[#allocation9 + $0xf8] sm:$0xff] }
  0x4a   :  { %850 = vmatpush3.msra.mxu0 %v83_v19  ;;  %885 = vmatpush3.msra.mxu1 %v180_v24  ;;  %v479_v16 = vld [vmem:[#allocation9 + $0xf0] sm:$0xff]  ;;  %v478_v17 = vld [vmem:[#allocation9 + $0xe8] sm:$0xff]  ;;  %v477_v18 = vld [vmem:[#allocation9 + $0xe0] sm:$0xff] }
  0x4b   :  { %851 = vmatprep.subr.mxu0 %v1162_v0  ;;  %886 = vmatprep.subr.mxu1 %v1162_v0  ;;  %v476_v19 = vld [vmem:[#allocation9 + $0xd8] sm:$0xff]  ;;  %v475_v20 = vld [vmem:[#allocation9 + $0xd0] sm:$0xff]  ;;  %v473_v22 = vld [vmem:[#allocation9 + $0xc0] sm:$0xff] }
  0x4c   :  { %852 = vmatpush3.msra.mxu0 %v82_v21  ;;  %887 = vmatpush3.msra.mxu1 %v179_v26  ;;  %v474_v21 = vld [vmem:[#allocation9 + $0xc8] sm:$0xff]  ;;  %v471_v24 = vld [vmem:[#allocation9 + $0xb0] sm:$0xff]  ;;  %v469_v26 = vld [vmem:[#allocation9 + $0xa0] sm:$0xff] }
  0x4d   :  { %853 = vmatprep.subr.mxu0 %v1162_v0  ;;  %888 = vmatprep.subr.mxu1 %v1162_v0 }
  0x4e   :  { %854 = vmatpush3.msra.mxu0 %v81_v23  ;;  %889 = vmatpush3.msra.mxu1 %v178_v28  ;;  %v472_v23 = vld [vmem:[#allocation9 + $0xb8] sm:$0xff]  ;;  %v718_v28 = vld [vmem:[%s1361_s4] ss:$0 sm:$0xff] }
  0x4f   :  { %855 = vmatprep.subr.mxu0 %v1162_v0  ;;  %890 = vmatprep.subr.mxu1 %v1162_v0 }
  0x50   :  { %856 = vmatpush3.msra.mxu0 %v80_v25  ;;  %891 = vmatpush3.msra.mxu1 %v177_v31  ;;  %v470_v25 = vld [vmem:[#allocation9 + $0xa8] sm:$0xff] }
  0x51   :  { %857 = vmatprep.subr.mxu0 %v1162_v0  ;;  %892 = vmatprep.subr.mxu1 %v1162_v0  ;;  %v466_v31 = vld [vmem:[#allocation9 + $0x88] sm:$0xff] }
  0x52   :  { %858 = vmatpush3.msra.mxu0 %v79_v27  ;;  %893 = vmatpush3.msra.mxu1 %v176_v32  ;;  %v468_v27 = vld [vmem:[#allocation9 + $0x98] sm:$0xff] }
  0x53   :  { %859 = vmatprep.subr.mxu0 %v1162_v0  ;;  %894 = vmatprep.subr.mxu1 %v1162_v0 }
  0x54   :  { %860 = vmatpush3.msra.mxu0 %v78_v29  ;;  %895 = vmatpush3.msra.mxu1 %v175_v33  ;;  %v467_v29 = vld [vmem:[#allocation9 + $0x90] sm:$0xff] }
  0x55   :  { %862 = vmatmul.mubr.f32.vlgmr.msra.gmra.mxu0 %v1252_v30  ;;  %899 = vmatprep.subr.mxu0 %v1162_v0 }
  0x56   :  { %931 = vmatprep.mubr.msk.f32.mxu0 %vm1163_vm0, %v1162_v0  ;;  %934 = vmatprep.subr.mxu1 %v1162_v0 }
  0x57   :  { %900 = vmatpush3.msra.mxu0 %v288_v34  ;;  %v465_v34 = vld [vmem:[#allocation9 + $0x80] sm:$0xff] }
  0x58   :  { %901 = vmatprep.subr.mxu0 %v1162_v0 }
  0x59   :  { %902 = vmatpush3.msra.mxu0 %v287_v35 }
  0x5a   :  { %903 = vmatprep.subr.mxu0 %v1162_v0 }
  0x5b   :  { %904 = vmatpush3.msra.mxu0 %v286_v36 }
  0x5c   :  { %905 = vmatprep.subr.mxu0 %v1162_v0 }
  0x5d   :  { %906 = vmatpush3.msra.mxu0 %v285_v37  ;;  %v578_v37 = vld [vmem:[#allocation9 + $0x178] sm:$0xff] }
  0x5e   :  { %907 = vmatprep.subr.mxu0 %v1162_v0 }
  0x5f   :  { %908 = vmatpush3.msra.mxu0 %v284_v38  ;;  %v577_v38 = vld [vmem:[#allocation9 + $0x170] sm:$0xff] }
  0x60   :  { %909 = vmatprep.subr.mxu0 %v1162_v0 }
  0x61   :  { %910 = vmatpush3.msra.mxu0 %v283_v39  ;;  %v576_v39 = vld [vmem:[#allocation9 + $0x168] sm:$0xff] }
  0x62   :  { %911 = vmatprep.subr.mxu0 %v1162_v0 }
  0x63   :  { %912 = vmatpush3.msra.mxu0 %v282_v40  ;;  %v575_v40 = vld [vmem:[#allocation9 + $0x160] sm:$0xff] }
  0x64   :  { %913 = vmatprep.subr.mxu0 %v1162_v0 }
  0x65   :  { %914 = vmatpush3.msra.mxu0 %v281_v41  ;;  %v574_v41 = vld [vmem:[#allocation9 + $0x158] sm:$0xff] }
  0x66   :  { %915 = vmatprep.subr.mxu0 %v1162_v0 }
  0x67   :  { %916 = vmatpush3.msra.mxu0 %v280_v42  ;;  %v573_v42 = vld [vmem:[#allocation9 + $0x150] sm:$0xff] }
  0x68   :  { %917 = vmatprep.subr.mxu0 %v1162_v0 }
  0x69   :  { %918 = vmatpush3.msra.mxu0 %v279_v43  ;;  %v572_v43 = vld [vmem:[#allocation9 + $0x148] sm:$0xff] }
  0x6a   :  { %919 = vmatprep.subr.mxu0 %v1162_v0 }
  0x6b   :  { %920 = vmatpush3.msra.mxu0 %v278_v44  ;;  %v571_v44 = vld [vmem:[#allocation9 + $0x140] sm:$0xff] }
  0x6c   :  { %921 = vmatprep.subr.mxu0 %v1162_v0 }
  0x6d   :  { %922 = vmatpush3.msra.mxu0 %v277_v45  ;;  %v570_v45 = vld [vmem:[#allocation9 + $0x138] sm:$0xff] }
  0x6e   :  { %923 = vmatprep.subr.mxu0 %v1162_v0 }
  0x6f   :  { %924 = vmatpush3.msra.mxu0 %v276_v46  ;;  %v569_v46 = vld [vmem:[#allocation9 + $0x130] sm:$0xff] }
  0x70   :  { %925 = vmatprep.subr.mxu0 %v1162_v0 }
  0x71   :  { %926 = vmatpush3.msra.mxu0 %v275_v6  ;;  %v678_v6 = vld [vmem:[#allocation10 + $0x8] sm:$0xff] }
  0x72   :  { %927 = vmatprep.subr.mxu0 %v1162_v0 }
  0x73   :  { %928 = vmatpush3.msra.mxu0 %v274_v7 }
  0x74   :  { %929 = vmatprep.subr.mxu0 %v1162_v0 }
  0x75   :  { %930 = vmatpush3.msra.mxu0 %v273_v8 }
  0x76   :  { %969 = vmatprep.subr.mxu0 %v1162_v0 }
 0x115   :  { %v167_v48 = vpop.f32.mrf.mxu0 }
 0x116   :  { %v168_v49 = vadd.f32 %v713_v47, %v167_v48  ;;  %v568_v47 = vld [vmem:[#allocation9 + $0x128] sm:$0xff]  ;;  %v567_v48 = vld [vmem:[#allocation9 + $0x120] sm:$0xff] }
 0x117   :  { %v863_v50 = vpop.f32.mrf.mxu0 }
 0x118   :  { %v172_v51 = vmul.f32 0.2, %v168_v49  ;;  %vm171_vm1 = vcmp.gt.f32.partialorder %v168_v49, 0.0  ;;  %v565_v50 = vld [vmem:[#allocation9 + $0x110] sm:$0xff] }
 0x11a   :  { %v173_v53 = vsel %vm171_vm1, %v168_v49, %v172_v51  ;;  %v566_v49 = vld [vmem:[#allocation9 + $0x118] sm:$0xff]  ;;  %v564_v51 = vld [vmem:[#allocation9 + $0x108] sm:$0xff] }
 0x11b   :  { %897 = vmatmul.mubr.f32.vlgmr.msra.gmra.mxu1 %v173_v53  ;;  %v717_v53 = vld [vmem:[%s1359_s2 + $0x2] ss:$0 sm:$0xff]  ;;  %s1164_s2 = smov [#allocation12]  }
 0x11c   :  { %935 = vmatpush3.msra.mxu1 %v383_v52  ;;  %966 = vmatprep.mubr.msk.f32.mxu1 %vm1163_vm0, %v1162_v0  ;;  %v563_v52 = vld [vmem:[#allocation9 + $0x100] sm:$0xff]  ;;  %s699_s29 = sshll.u32 %s1164_s2, 4  ;;  %s700_s29 = int_to_ptr.vmem [resolvable:$true] %s699_s29 }
 0x11d   :  { %936 = vmatprep.subr.mxu1 %v1162_v0  ;;  %p1133_p7 = scmp.lt.s32.totalorder %s700_s29, %s700_s29 }
 0x11e   :  { %937 = vmatpush3.msra.mxu1 %v382_v54 }
 0x11f   :  { %938 = vmatprep.subr.mxu1 %v1162_v0 }
 0x120   :  { %939 = vmatpush3.msra.mxu1 %v381_v55 }
 0x121   :  { %940 = vmatprep.subr.mxu1 %v1162_v0 }
 0x122   :  { %941 = vmatpush3.msra.mxu1 %v380_v56 }
 0x123   :  { %942 = vmatprep.subr.mxu1 %v1162_v0 }
 0x124   :  { %943 = vmatpush3.msra.mxu1 %v379_v57  ;;  %v720_v57 = vld [vmem:[%s1361_s4 + $0x1] ss:$0 sm:$0xff] }
 0x125   :  { %944 = vmatprep.subr.mxu1 %v1162_v0 }
 0x126   :  { %945 = vmatpush3.msra.mxu1 %v378_v58 }
 0x127   :  { %946 = vmatprep.subr.mxu1 %v1162_v0 }
 0x128   :  { %947 = vmatpush3.msra.mxu1 %v377_v59 }
 0x129   :  { %948 = vmatprep.subr.mxu1 %v1162_v0 }
 0x12a   :  { %949 = vmatpush3.msra.mxu1 %v376_v60 }
 0x12b   :  { %950 = vmatprep.subr.mxu1 %v1162_v0 }
 0x12c   :  { %951 = vmatpush3.msra.mxu1 %v375_v61 }
 0x12d   :  { %952 = vmatprep.subr.mxu1 %v1162_v0 }
 0x12e   :  { %953 = vmatpush3.msra.mxu1 %v374_v62 }
 0x12f   :  { %954 = vmatprep.subr.mxu1 %v1162_v0 }
 0x130   :  { %955 = vmatpush3.msra.mxu1 %v373_v63 }
 0x131   :  { %956 = vmatprep.subr.mxu1 %v1162_v0 }
 0x132   :  { %957 = vmatpush3.msra.mxu1 %v372_v1 }
 0x133   :  { %958 = vmatprep.subr.mxu1 %v1162_v0 }
 0x134   :  { %959 = vmatpush3.msra.mxu1 %v371_v2 }
 0x135   :  { %960 = vmatprep.subr.mxu1 %v1162_v0 }
 0x136   :  { %961 = vmatpush3.msra.mxu1 %v370_v3  ;;  %v660_v3 = vld [vmem:[#allocation10] sm:$0xff] }
 0x137   :  { %962 = vmatprep.subr.mxu1 %v1162_v0 }
 0x138   :  { %963 = vmatpush3.msra.mxu1 %v369_v4 }
 0x139   :  { %964 = vmatprep.subr.mxu1 %v1162_v0 }
 0x13a   :  { %965 = vmatpush3.msra.mxu1 %v368_v5 }
 0x13b   :  { %967 = vmatmul.mubr.f32.vlgmr.msra.gmra.mxu1 %v1252_v30  ;;  %1004 = vmatprep.subr.mxu1 %v1162_v0 }
 0x13c   :  { %1036 = vmatprep.mubr.msk.f32.mxu1 %vm1163_vm0, %v1162_v0  ;;  %1005 = vmatpush3.msra.mxu1 %v578_v37 }
 0x13d   :  { %1006 = vmatprep.subr.mxu1 %v1162_v0 }
 0x13e   :  { %1007 = vmatpush3.msra.mxu1 %v577_v38 }
 0x13f   :  { %1008 = vmatprep.subr.mxu1 %v1162_v0 }
 0x140   :  { %1009 = vmatpush3.msra.mxu1 %v576_v39 }
 0x141   :  { %1010 = vmatprep.subr.mxu1 %v1162_v0 }
 0x142   :  { %1011 = vmatpush3.msra.mxu1 %v575_v40 }
 0x143   :  { %1012 = vmatprep.subr.mxu1 %v1162_v0 }
 0x144   :  { %1013 = vmatpush3.msra.mxu1 %v574_v41 }
 0x145   :  { %1014 = vmatprep.subr.mxu1 %v1162_v0 }
 0x146   :  { %1015 = vmatpush3.msra.mxu1 %v573_v42 }
 0x147   :  { %1016 = vmatprep.subr.mxu1 %v1162_v0 }
 0x148   :  { %1017 = vmatpush3.msra.mxu1 %v572_v43 }
 0x149   :  { %1018 = vmatprep.subr.mxu1 %v1162_v0 }
 0x14a   :  { %1019 = vmatpush3.msra.mxu1 %v571_v44 }
 0x14b   :  { %1020 = vmatprep.subr.mxu1 %v1162_v0 }
 0x14c   :  { %1021 = vmatpush3.msra.mxu1 %v570_v45 }
 0x14d   :  { %1022 = vmatprep.subr.mxu1 %v1162_v0 }
 0x14e   :  { %1023 = vmatpush3.msra.mxu1 %v569_v46 }
 0x14f   :  { %1024 = vmatprep.subr.mxu1 %v1162_v0 }
 0x150   :  { %1025 = vmatpush3.msra.mxu1 %v568_v47 }
 0x151   :  { %1026 = vmatprep.subr.mxu1 %v1162_v0 }
 0x152   :  { %1027 = vmatpush3.msra.mxu1 %v567_v48 }
 0x153   :  { %1028 = vmatprep.subr.mxu1 %v1162_v0 }
 0x154   :  { %1029 = vmatpush3.msra.mxu1 %v566_v49 }
 0x155   :  { %1030 = vmatprep.subr.mxu1 %v1162_v0 }
 0x156   :  { %1031 = vmatpush3.msra.mxu1 %v565_v50 }
 0x157   :  { %1032 = vmatprep.subr.mxu1 %v1162_v0 }
 0x158   :  { %1033 = vmatpush3.msra.mxu1 %v564_v51 }
 0x159   :  { %1034 = vmatprep.subr.mxu1 %v1162_v0 }
 0x15a   :  { %1035 = vmatpush3.msra.mxu1 %v563_v52 }
 0x1db   :  { %v265_v10 = vpop.f32.mrf.mxu1 }
 0x1dc   :  { %v266_v11 = vadd.f32 %v715_v9, %v265_v10 }
 0x1dd   :  { %v898_v12 = vpop.f32.mrf.mxu1 }
 0x1de   :  { %vm269_vm2 = vcmp.gt.f32.partialorder %v266_v11, 0.0  ;;  %v270_v13 = vmul.f32 0.2, %v266_v11 }
 0x1e0   :  { %v271_v15 = vsel %vm269_vm2, %v266_v11, %v270_v13 }
 0x1e1   :  { %932 = vmatmul.mubr.f32.vlgmr.msra.gmra.mxu0 %v271_v15 }
 0x1e2   :  { %970 = vmatpush3.msra.mxu0 %v480_v14  ;;  %1001 = vmatprep.mubr.msk.f32.mxu0 %vm1163_vm0, %v1162_v0 }
 0x1e3   :  { %971 = vmatprep.subr.mxu0 %v1162_v0 }
 0x1e4   :  { %972 = vmatpush3.msra.mxu0 %v479_v16 }
 0x1e5   :  { %973 = vmatprep.subr.mxu0 %v1162_v0 }
 0x1e6   :  { %974 = vmatpush3.msra.mxu0 %v478_v17 }
 0x1e7   :  { %975 = vmatprep.subr.mxu0 %v1162_v0 }
 0x1e8   :  { %976 = vmatpush3.msra.mxu0 %v477_v18 }
 0x1e9   :  { %977 = vmatprep.subr.mxu0 %v1162_v0 }
 0x1ea   :  { %978 = vmatpush3.msra.mxu0 %v476_v19 }
 0x1eb   :  { %979 = vmatprep.subr.mxu0 %v1162_v0 }
 0x1ec   :  { %980 = vmatpush3.msra.mxu0 %v475_v20 }
 0x1ed   :  { %981 = vmatprep.subr.mxu0 %v1162_v0 }
 0x1ee   :  { %982 = vmatpush3.msra.mxu0 %v474_v21 }
 0x1ef   :  { %983 = vmatprep.subr.mxu0 %v1162_v0 }
 0x1f0   :  { %984 = vmatpush3.msra.mxu0 %v473_v22 }
 0x1f1   :  { %985 = vmatprep.subr.mxu0 %v1162_v0 }
 0x1f2   :  { %986 = vmatpush3.msra.mxu0 %v472_v23 }
 0x1f3   :  { %987 = vmatprep.subr.mxu0 %v1162_v0 }
 0x1f4   :  { %988 = vmatpush3.msra.mxu0 %v471_v24 }
 0x1f5   :  { %989 = vmatprep.subr.mxu0 %v1162_v0 }
 0x1f6   :  { %990 = vmatpush3.msra.mxu0 %v470_v25 }
 0x1f7   :  { %991 = vmatprep.subr.mxu0 %v1162_v0 }
 0x1f8   :  { %992 = vmatpush3.msra.mxu0 %v469_v26 }
 0x1f9   :  { %993 = vmatprep.subr.mxu0 %v1162_v0 }
 0x1fa   :  { %994 = vmatpush3.msra.mxu0 %v468_v27 }
 0x1fb   :  { %v457_v30 = vpop.f32.mrf.mxu1  ;;  %995 = vmatprep.subr.mxu0 %v1162_v0 }
 0x1fc   :  { %v458_v32 = vadd.f32 %v718_v28, %v457_v30  ;;  %996 = vmatpush3.msra.mxu0 %v467_v29 }
 0x1fd   :  { %v968_v33 = vpop.f32.mrf.mxu1  ;;  %997 = vmatprep.subr.mxu0 %v1162_v0 }
 0x1fe   :  { %vm461_vm3 = vcmp.gt.f32.partialorder %v458_v32, 0.0  ;;  %v462_v35 = vmul.f32 0.2, %v458_v32  ;;  %998 = vmatpush3.msra.mxu0 %v466_v31 }
 0x1ff   :  { %999 = vmatprep.subr.mxu0 %v1162_v0  ;;  %v722_v0 = vld [vmem:[%s1361_s4 + $0x2] ss:$0 sm:$0xff]  ;;  %s1128_s4 = scalar_lea.vmem %s700_s29, 256 }
 0x200   :  { %1000 = vmatpush3.msra.mxu0 %v465_v34  ;;  %v463_v36 = vsel %vm461_vm3, %v458_v32, %v462_v35  ;;  %p1129_p6 = scmp.ne.s32.totalorder %s700_s29, %s1128_s4  ;;  %p1134_p8 = scmp.lt.s32.totalorder %s1128_s4, %s1128_s4 }
 0x201   :  { %1002 = vmatmul.mubr.f32.vlgmr.msra.gmra.mxu0 %v463_v36 }
 0x202   :  { %p1135_p9 = por %p1134_p8, %p1133_p7 }
 0x204   :  { %p1136_p10 = pnand %p1135_p9, %p1129_p6 }
 0x2a1   :  { %v363_v54 = vpop.f32.mrf.mxu0 }
 0x2a2   :  { %v364_v55 = vadd.f32 %v717_v53, %v363_v54 }
 0x2a3   :  { %v933_v56 = vpop.f32.mrf.mxu0 }
 0x2a4   :  { %367 = vst [vmem:[#allocation2] sm:$0x3] %v364_v55 }
 0x2ab   :  { %v723_v4 = vld [vmem:[#allocation2] ss:$0 sm:$0xff]  ;;  %v725_v5 = vld [vmem:[#allocation2 + $0x1] ss:$0 sm:$0xff] }
 0x2ac   :  { %v665_v7 = vmul.f32 %v723_v4, %v660_v3  ;;  %v683_v8 = vmul.f32 %v725_v5, %v678_v6 }
 0x2c1   :  { %v555_v58 = vpop.f32.mrf.mxu0 }
 0x2c2   :  { %v556_v59 = vadd.f32 %v720_v57, %v555_v58 }
 0x2c3   :  { %v1003_v60 = vpop.f32.mrf.mxu0 }
 0x2c4   :  { %vm559_vm4 = vcmp.gt.f32.partialorder %v556_v59, 0.0  ;;  %v560_v61 = vmul.f32 0.2, %v556_v59 }
 0x2c6   :  { %v561_v62 = vsel %vm559_vm4, %v556_v59, %v560_v61 }
 0x2c7   :  { %1037 = vmatmul.mubr.f32.vlgmr.msra.gmra.mxu1 %v561_v62 }
 0x387   :  { %v653_v63 = vpop.f32.mrf.mxu1 }
 0x388   :  { %v654_v1 = vadd.f32 %v722_v0, %v653_v63 }
 0x389   :  { %v1038_v2 = vpop.f32.mrf.mxu1 }
 0x38a   :  { %657 = vst [vmem:[#allocation3] sm:$0x3] %v654_v1 }
 0x391   :  { %v724_v9 = vld [vmem:[#allocation3] ss:$0 sm:$0xff]  ;;  %v726_v10 = vld [vmem:[#allocation3 + $0x1] ss:$0 sm:$0xff] }
 0x392   :  { %v670_v11 = vadd.f32 %v724_v9, %v665_v7  ;;  %v688_v12 = vadd.f32 %v726_v10, %v683_v8 }
 0x394   :  { %vm671_vm5 = vcmp.gt.f32.partialorder %v670_v11, 0.0  ;;  %v672_v13 = vmul.f32 0.2, %v670_v11  ;;  %vm689_vm6 = vcmp.gt.f32.partialorder %v688_v12, 0.0  ;;  %v690_v14 = vmul.f32 0.2, %v688_v12 }
 0x396   :  { %v673_v15 = vsel %vm671_vm5, %v670_v11, %v672_v13  ;;  %v691_v16 = vsel %vm689_vm6, %v688_v12, %v690_v14 }
 0x397   :  { %674 = vst [vmem:[#allocation12] sm:$0xff] %v673_v15  ;;  %693 = vst [vmem:[#allocation12 + $0x8] sm:$0xff] %v691_v16 }
 0x398   :  { %1139 = shalt.err (!%p1136_p10)
}
 0x399   :  { %705 = dma.vmem_to_hbm [thread:$0]  %s700_s29, 256, %s1363_s6, [#allocation6], %s1157_s24, %s1157_s24, %s1158_s25  }
 0x39a   :  { %1154 = dma.done.wait [#allocation6], 256  }
 0x39b   :  { %1155 = vsyncadd [#allocation6], 4294967040 }
 0x39c   :  { %709 = vsyncpa [#allocation5], 1 }
 0x39d   :  { %710 = vsyncpa [#allocation8], 1 }
 0x39e   :  { %711 = vsyncpa [#allocation11], 1 }
 0x39f   :  { %712 = vsyncpa [#allocation6], 1 }

</bundles_post_ra>
